<compile_context>
chip_gen: v5e
topology: v5e:2x2
jax: 0.10.0
libtpu: 0.0.40
codegen_flags: <defaults>
</compile_context>

<pallas_src>
import functools
import math

import jax
import jax.numpy as jnp
from jax.experimental import pallas as pl
from jax.experimental.pallas import tpu as pltpu


def _round_up(x, m):
    return (x + m - 1) // m * m


def _vmem_capacity_bytes():
    """Physical VMEM of the attached TPU; conservative fallback if unknown."""
    try:
        return int(pltpu.get_tpu_info().vmem_capacity_bytes)
    except Exception:
        return 64 * 2**20  # v7x has the smallest VMEM -> safe default


# ---------------------------------------------------------------------------
# Path A: table resident in VMEM, one-hot MXU gather (small vocab).
# ---------------------------------------------------------------------------
def _onehot_kernel(ids_ref, lut_ref, out_ref, *, scale):
    # ids_ref: (T, 1) int32 block; lut_ref: (n_token, d_model) resident table.
    ids = ids_ref[...]                                               # (T, 1)
    n_tok = lut_ref.shape[0]
    iota = jax.lax.broadcasted_iota(jnp.int32, (ids.shape[0], n_tok), 1)
    onehot = (iota == ids).astype(lut_ref.dtype)                     # (T, n_token)
    emb = jnp.dot(onehot, lut_ref[...], preferred_element_type=jnp.float32)
    out_ref[...] = (emb * scale).astype(out_ref.dtype)


def _embeddings_onehot(flat_ids, lut, *, block_tokens, vmem_limit):
    n_token, d_model = lut.shape
    num_padded = flat_ids.shape[0]
    num_blocks = num_padded // block_tokens
    scale = math.sqrt(d_model)
    itemsize = jnp.dtype(lut.dtype).itemsize

    ids2d = flat_ids.reshape(num_padded, 1)
    kernel = functools.partial(_onehot_kernel, scale=scale)

    cost = pl.CostEstimate(
        flops=2 * num_padded * n_token * d_model,
        transcendentals=0,
        bytes_accessed=int(num_padded * 4
                           + n_token * d_model * itemsize
                           + num_padded * d_model * itemsize),
    )

    return pl.pallas_call(
        kernel,
        out_shape=jax.ShapeDtypeStruct((num_padded, d_model), lut.dtype),
        grid_spec=pltpu.PrefetchScalarGridSpec(
            num_scalar_prefetch=0,
            grid=(num_blocks,),
            in_specs=[
                # per-block token ids (vector operand of the one-hot compare)
                pl.BlockSpec((block_tokens, 1), lambda i: (i, 0)),
                # full-array block, constant index -> table DMA'd once, resident
                pl.BlockSpec((n_token, d_model), lambda i: (0, 0)),
            ],
            out_specs=pl.BlockSpec((block_tokens, d_model), lambda i: (i, 0)),
        ),
        compiler_params=pltpu.CompilerParams(
            dimension_semantics=("parallel",),
            vmem_limit_bytes=vmem_limit,
        ),
        cost_estimate=cost,
    )(ids2d, lut)


# ---------------------------------------------------------------------------
# Path B: table in HBM; cross-step double-buffered per-row DMA gather.
# ---------------------------------------------------------------------------
def _gather_kernel(ids_smem, lut_hbm, out_ref, rows_vmem, sems, *,
                   block_tokens, scale):
    T = block_tokens
    i = pl.program_id(0)
    nb = pl.num_programs(0)
    slot = i % 2
    nxt = 1 - slot

    def issue(block_idx, slot_):
        src_base = block_idx * T
        dst_base = slot_ * T
        for t in range(T):                       # static unroll: all T DMAs in flight
            row = ids_smem[src_base + t]
            pltpu.make_async_copy(
                lut_hbm.at[pl.ds(row, 1), :],
                rows_vmem.at[pl.ds(dst_base + t, 1), :],
                sems.at[dst_base + t],
            ).start()

    # Prime: the first block has no earlier step to prefetch its rows.
    @pl.when(i == 0)
    def _():
        issue(0, 0)

    # Cross-step double buffer: issue block i+1's row gathers into the other
    # slot now, so their HBM latency hides behind this block's waits/stores
    # and the pipelined output writeback.
    @pl.when(i + 1 < nb)
    def _():
        issue(jnp.minimum(i + 1, nb - 1), nxt)

    # Wait + store in sublane-dense 8-row slabs; tail DMAs overlap the stores
    # of earlier slabs.
    base = slot * T
    for c in range(0, T, 8):
        for t in range(c, c + 8):
            pltpu.make_async_copy(
                lut_hbm.at[pl.ds(0, 1), :],
                rows_vmem.at[pl.ds(base + t, 1), :],
                sems.at[base + t],
            ).wait()
        start = pl.multiple_of(base + c, 8)
        slab = rows_vmem[pl.ds(start, 8), :]
        out_ref[c:c + 8, :] = (slab.astype(jnp.float32) * scale).astype(out_ref.dtype)


def _embeddings_gather(flat_ids, lut, *, block_tokens):
    n_token, d_model = lut.shape
    num_padded = flat_ids.shape[0]
    num_blocks = num_padded // block_tokens
    scale = math.sqrt(d_model)
    itemsize = jnp.dtype(lut.dtype).itemsize

    kernel = functools.partial(_gather_kernel, block_tokens=block_tokens, scale=scale)

    cost = pl.CostEstimate(
        flops=num_padded * d_model,
        transcendentals=0,
        bytes_accessed=int(num_padded * 4 + 2 * num_padded * d_model * itemsize),
    )

    return pl.pallas_call(
        kernel,
        out_shape=jax.ShapeDtypeStruct((num_padded, d_model), lut.dtype),
        grid_spec=pltpu.PrefetchScalarGridSpec(
            num_scalar_prefetch=1,                           # flat token ids -> SMEM
            grid=(num_blocks,),
            in_specs=[pl.BlockSpec(memory_space=pl.ANY)],    # lut stays in HBM
            out_specs=pl.BlockSpec((block_tokens, d_model), lambda i, ids: (i, 0)),
            scratch_shapes=[
                pltpu.VMEM((2 * block_tokens, d_model), lut.dtype),   # 2 slots
                pltpu.SemaphoreType.DMA((2 * block_tokens,)),
            ],
        ),
        compiler_params=pltpu.CompilerParams(
            # cross-step double buffering carries state in scratch -> arbitrary
            dimension_semantics=("arbitrary",),
        ),
        cost_estimate=cost,
    )(flat_ids, lut)


# ---------------------------------------------------------------------------
# Wrapper: forward of the PyTorch Embeddings module.
# ---------------------------------------------------------------------------
def embeddings_forward(ids, lut, *, block_tokens=128, gather_block_tokens=64,
                       onehot_vocab_max=2048, force_path=None):
    """ids: int array (...,); lut: (n_token, d_model). Returns ids.shape + (d_model,)."""
    n_token, d_model = lut.shape
    # Clamp untrusted token ids so the row gather can never go out of bounds.
    flat_ids = jnp.clip(ids.reshape(-1).astype(jnp.int32), 0, n_token - 1)
    num_tokens = flat_ids.shape[0]
    itemsize = jnp.dtype(lut.dtype).itemsize

    def pick_block(cap):
        return max(8, min(_round_up(cap, 8), _round_up(num_tokens, 8)))

    t_onehot = pick_block(block_tokens)
    t_gather = pick_block(min(block_tokens, gather_block_tokens))

    # VMEM budget for the resident path, derived from the chip's real capacity
    # (v7x = 64 MiB, v5e/v6e = 128 MiB).  The resident table block may be
    # double-buffered by the default pipeline even though its block index
    # never changes, so it is counted twice.
    vmem_cap = _vmem_capacity_bytes()
    table_bytes = n_token * d_model * itemsize
    onehot_need = (2 * table_bytes                        # resident table (x2 buffers)
                   + 2 * t_onehot * d_model * itemsize    # out tiles (x2 buffers)
                   + 2 * t_onehot * 128 * 4               # id tiles (lane-padded)
                   + t_onehot * n_token * 4               # one-hot intermediate
                   + (4 << 20))                           # compiler-internal slack
    onehot_fits = onehot_need <= vmem_cap - (4 << 20)

    if force_path == "onehot":
        use_onehot = True
    elif force_path == "gather":
        use_onehot = False
    else:
        use_onehot = (n_token <= onehot_vocab_max) and onehot_fits

    t = t_onehot if use_onehot else t_gather
    num_padded = _round_up(num_tokens, t)
    if num_padded != num_tokens:
        # Padded tail tokens gather row 0 and are sliced off below.
        flat_ids = jnp.pad(flat_ids, (0, num_padded - num_tokens))

    if use_onehot:
        vmem_limit = int(min(max(onehot_need, 32 << 20), vmem_cap - (2 << 20)))
        out_flat = _embeddings_onehot(flat_ids, lut, block_tokens=t,
                                      vmem_limit=vmem_limit)
    else:
        out_flat = _embeddings_gather(flat_ids, lut, block_tokens=t)

    return out_flat[:num_tokens].reshape(*ids.shape, d_model)


if __name__ == "__main__":
    # Module hyper-params (synthetic, deterministic init)
    n_token = 16
    d_model = 32
    batch, seq = 2, 8

    key = jax.random.PRNGKey(0)
    k_lut, k_ids, k_ids2 = jax.random.split(key, 3)

    # nn.Embedding weight ~ N(0, 1), shape (n_token, d_model)
    lut = jax.random.normal(k_lut, (n_token, d_model), dtype=jnp.float32)
    ids = jax.random.randint(k_ids, (batch, seq), 0, n_token, dtype=jnp.int32)

    ref = jnp.take(lut, ids, axis=0) * math.sqrt(d_model)

    # Path A: resident table + one-hot MXU gather (what the heuristic picks).
    out_a = jax.block_until_ready(embeddings_forward(ids, lut))
    assert out_a.shape == (batch, seq, d_model)
    assert jnp.allclose(out_a, ref, atol=1e-5, rtol=1e-5)

    # Path A, multi-block with padding (exercises grid > 1 and the pad/slice).
    ids_big = jax.random.randint(k_ids2, (3, 50), 0, n_token, dtype=jnp.int32)
    ref_big = jnp.take(lut, ids_big, axis=0) * math.sqrt(d_model)
    out_big = jax.block_until_ready(embeddings_forward(ids_big, lut))
    assert out_big.shape == (3, 50, d_model)
    assert jnp.allclose(out_big, ref_big, atol=1e-5, rtol=1e-5)

    # Path B, multi-block: exercises cross-step double buffering of row DMAs.
    out_b = jax.block_until_ready(
        embeddings_forward(ids, lut, block_tokens=8, force_path="gather"))
    assert jnp.allclose(out_b, ref, atol=1e-5, rtol=1e-5)

    # Path B, single block of 16: exercises the chunked (8-row) wait/store.
    out_c = jax.block_until_ready(
        embeddings_forward(ids, lut, block_tokens=16, force_path="gather"))
    assert jnp.allclose(out_c, ref, atol=1e-5, rtol=1e-5)

    print("KERNEL_OK")
</pallas_src>

<mosaic_0001>
module attributes {stable_mosaic.version = 11 : i64} {
  func.func @_onehot_kernel(%arg0: i32, %arg1: memref<16x1xi32, #tpu.memory_space<vmem>>, %arg2: memref<16x32xf32, #tpu.memory_space<vmem>>, %arg3: memref<16x32xf32, #tpu.memory_space<vmem>>) attributes {dimension_semantics = [#tpu.dimension_semantics<parallel>], iteration_bounds = array<i64: 1>, scalar_prefetch = 0 : i64, scratch_operands = 0 : i64, tpu.core_type = #tpu.core_type<tc>, window_params = [{transform_indices = @transform_0, window_bounds = array<i64: 16, 1>}, {pipeline_mode = #tpu.pipeline_mode<synchronous>, transform_indices = @transform_1, window_bounds = array<i64: 16, 32>}, {transform_indices = @transform_2, window_bounds = array<i64: 16, 32>}]} {
    %c0 = arith.constant 0 : index
    %c0_0 = arith.constant 0 : index
    %0 = vector.load %arg1[%c0, %c0_0] : memref<16x1xi32, #tpu.memory_space<vmem>>, vector<16x1xi32>
    %1 = tpu.iota {dimensions = array<i32: 1>} : vector<16x16xi32>
    %2 = vector.broadcast %0 : vector<16x1xi32> to vector<16x16xi32>
    %3 = arith.cmpi eq, %1, %2 : vector<16x16xi32>
    %4 = arith.extui %3 : vector<16x16xi1> to vector<16x16xi32>
    %5 = arith.sitofp %4 : vector<16x16xi32> to vector<16x16xf32>
    %c0_1 = arith.constant 0 : index
    %c0_2 = arith.constant 0 : index
    %6 = vector.load %arg2[%c0_1, %c0_2] : memref<16x32xf32, #tpu.memory_space<vmem>>, vector<16x32xf32>
    %cst = arith.constant dense<0.000000e+00> : vector<16x32xf32>
    %7 = tpu.matmul %5, %6, %cst {dimension_numbers = #tpu.dot_dimension_numbers<[1], [0], [0], [1], [0, 0, 1, 1], [], []>} : vector<16x16xf32>, vector<16x32xf32>, vector<16x32xf32> -> vector<16x32xf32>
    %cst_3 = arith.constant 5.65685415 : f32
    %8 = vector.broadcast %cst_3 : f32 to vector<16x32xf32>
    %9 = arith.mulf %7, %8 : vector<16x32xf32>
    %c0_4 = arith.constant 0 : index
    %c0_5 = arith.constant 0 : index
    %10 = vector.load %arg3[%c0_4, %c0_5] : memref<16x32xf32, #tpu.memory_space<vmem>>, vector<16x32xf32>
    tpu.vector_store %arg3[%c0_4, %c0_5], %9 {strides = array<i32>} : memref<16x32xf32, #tpu.memory_space<vmem>>, vector<16x32xf32>,
    return
  }
  func.func @transform_0(%arg0: i32) -> (i32, i32) {
    %c0_i32 = arith.constant 0 : i32
    %c0_i32_0 = arith.constant 0 : i32
    return %arg0, %c0_i32 : i32, i32
  }
  func.func @transform_1(%arg0: i32) -> (i32, i32) {
    %c0_i32 = arith.constant 0 : i32
    %c0_i32_0 = arith.constant 0 : i32
    %c0_i32_1 = arith.constant 0 : i32
    return %c0_i32, %c0_i32_0 : i32, i32
  }
  func.func @transform_2(%arg0: i32) -> (i32, i32) {
    %c0_i32 = arith.constant 0 : i32
    %c0_i32_0 = arith.constant 0 : i32
    return %arg0, %c0_i32 : i32, i32
  }
}

</mosaic_0001>

<bundles_post_ra>
// kernel: tpu_custom_call.1
= control target key start
LH: loop header
LB: loop body
LE: loop exit
PB: predicated region body
PF: predicated region fallthrough
CT: control target
= control target key end

     0   :  { %v121_v2 = vmov 0   ;;  %s156_s0 = inlined_call_operand.vmem [shape: s32[16,1], index: 0, kind: input, shape index: {}]   ;;  %s157_s1 = inlined_call_operand.vmem [shape: f32[16,32], index: 1, kind: input, shape index: {}]   ;;  %s158_s2 = inlined_call_operand.hbm [shape: f32[16,32], index: 2, kind: output, shape index: {}]  }
   0x1   :  { %v12_v0 = vld [vmem:[%s156_s0] sm:$0xff]  ;;  %v29_v1 = vld [vmem:[%s157_s1 + $0x8] sm:$0xff]  ;;  %94 = vset.pattern.permute.xlu0 %v121_v2 }
   0x2   :  { %51 = vmatpush.msra.mxu0 %v29_v1 }
   0x3   :  { %7 = vsyncpa [#allocation3], 0  ;;  %17 = vperm.xlu0 %94, %v12_v0   ;;  %87 = vmatpush.msra.mxu1 %v29_v1  ;;  %v13_v3 = vld [vmem:[%s156_s0 + $0x8] sm:$0xff]  ;;  %v28_v4 = vld [vmem:[%s157_s1] sm:$0xff]  ;;  %v14_v5 = vlaneseq  ;;  %vm30_vm0 = vcmask 130048   ;;  %v122_v8 = vmov 0.0  }
   0x4   :  { %52 = vmatpush.msra.mxu0 %v28_v4  ;;  %vm62_vm3 = vcmask 261120   ;;  %s123_s0 = smov [#allocation2]   ;;  %s71_s19 = sshll.u32 %s158_s2, 4  ;;  %s72_s19 = int_to_ptr.hbm [resolvable:$true] %s71_s19 }
   0x5   :  { %88 = vmatpush.msra.mxu1 %v28_v4  ;;  %v15_v6 = vand.u32 127, %v14_v5  ;;  %s69_s1 = sshll.u32 %s123_s0, 4  ;;  %s124_s20 = smov 128   ;;  %s70_s1 = int_to_ptr.vmem [resolvable:$true] %s69_s1 }
   0x6   :  { %s125_s21 = smov 8  }
   0xb   :  { %20 = vperm.xlu0 %94, %v13_v3  }
  0x75   :  { %v18_v7 = vpop.permute.xlu0 %17 }
  0x76   :  { %vm22_vm1 = vcmp.eq.s32.totalorder %v15_v6, %v18_v7 }
  0x77   :  { %v83_v9 = vsel %vm22_vm1, 1.0, %v122_v8 }
  0x78   :  { %85 = vmatmul.msk.f32.vlgmr.msra.gmra.mxu0 %vm30_vm0, %v83_v9 }
  0x7d   :  { %v21_v10 = vpop.permute.xlu0 %20 }
  0x7e   :  { %vm23_vm2 = vcmp.eq.s32.totalorder %v15_v6, %v21_v10 }
  0x7f   :  { %v84_v11 = vsel %vm23_vm2, 1.0, %v122_v8 }
  0x80   :  { %86 = vmatmul.msk.f32.vlgmr.msra.gmra.mxu1 %vm30_vm0, %v84_v11 }
  0xf5   :  { %v54_v12 = vpop.f32.mrf.mxu0 }
  0xf6   :  { %v60_v13 = vmul.f32 5.656854, %v54_v12 }
  0xf8   :  { %63 = vst.msk [vmem:[#allocation2] sm:$0xff] %vm62_vm3, %v60_v13 }
  0xfd   :  { %v57_v14 = vpop.f32.mrf.mxu1 }
  0xfe   :  { %v61_v15 = vmul.f32 5.656854, %v57_v14 }
 0x100   :  { %64 = vst.msk [vmem:[#allocation2 + $0x8] sm:$0xff] %vm62_vm3, %v61_v15 }
 0x101   :  { %77 = dma.vmem_to_hbm [thread:$0]  %s70_s1, 256, %s72_s19, [#allocation3], %s124_s20, %s124_s20, %s125_s21  }
 0x102   :  { %119 = dma.done.wait [#allocation3], 256  }
 0x103   :  { %120 = vsyncadd [#allocation3], 4294967040 }
 0x104   :  { %82 = vsyncpa [#allocation3], 1 }

</bundles_post_ra>
